<compile_context>
chip_gen: v7x
topology: tpu7x:2x2x1
jax: 0.10.0
libtpu: 0.0.40
codegen_flags: <defaults>
</compile_context>

<pallas_src>
import functools
import math
from collections import namedtuple

import jax
import jax.numpy as jnp
from jax.experimental import pallas as pl
from jax.experimental.pallas import tpu as pltpu


def _round_up(v, n):
    return ((v + n - 1) // n) * n


def _cdiv(a, b):
    return -(-a // b)


@functools.lru_cache(maxsize=1)
def _hw_config():
    """Per-generation VMEM budget / tiling targets (with safe fallbacks)."""
    kind = ""
    try:
        kind = jax.devices()[0].device_kind.lower()
    except Exception:
        pass
    vmem_cap = None
    try:
        vmem_cap = int(pltpu.get_tpu_info().vmem_capacity_bytes)
    except Exception:
        vmem_cap = None
    if vmem_cap is None:
        vmem_cap = (64 << 20) if "v7" in kind else (128 << 20)
    if vmem_cap >= (128 << 20):
        vmem_limit = 100 << 20                      # v5e/v6e: above scoped default
    else:
        vmem_limit = max(vmem_cap - (12 << 20), (vmem_cap * 3) // 4)  # v7x headroom
    vmem_budget = max(vmem_limit - (6 << 20), 16 << 20)
    two_cores = any(s in kind for s in ("v7", "v4", "v5p"))
    mxu_256 = not any(s in kind for s in ("v2", "v3", "v4", "v5"))
    target_tm = 1024 if vmem_cap >= (96 << 20) else 512
    return {
        "vmem_limit": vmem_limit,
        "vmem_budget": vmem_budget,
        "two_cores": two_cores,
        "mxu_256": mxu_256,
        "target_tm": target_tm,
    }


def _pad_feature_dim(d, mxu_256):
    p = _round_up(d, 128)
    # 256x256-MXU parts (v6e/v7x): round awkward dims (e.g. 384) up to 256 lanes.
    if mxu_256 and d > 128 and p % 256 != 0:
        p = _round_up(d, 256)
    return p


FFNParams = namedtuple(
    "FFNParams", ["w1", "b1", "w2", "b2", "n_embd", "hidden", "c_p", "h_p"])


def prepare_feed_forward_params(w1, b1, w2, b2, *, mxu_dtype=jnp.bfloat16):
    """One-time weight prep: pad to lane granularity, cast matmul operands to
    bf16 (biases stay f32). Call once and reuse; never in the per-call path."""
    c, hidden = w1.shape
    cfg = _hw_config()
    c_p = _pad_feature_dim(c, cfg["mxu_256"])
    h_p = _pad_feature_dim(hidden, cfg["mxu_256"])
    w1p = jnp.pad(w1, ((0, c_p - c), (0, h_p - hidden))).astype(mxu_dtype)
    w2p = jnp.pad(w2, ((0, h_p - hidden), (0, c_p - c))).astype(mxu_dtype)
    b1p = jnp.pad(b1, (0, h_p - hidden)).reshape(1, h_p).astype(jnp.float32)
    b2p = jnp.pad(b2, (0, c_p - c)).reshape(1, c_p).astype(jnp.float32)
    return FFNParams(w1p, b1p, w2p, b2p, c, hidden, c_p, h_p)


def _footprint_bytes(tm, th, c_p, x_bytes, out_bytes):
    w = 2 * 2 * (c_p * th + th * c_p)   # double-buffered bf16 W1/W2 tiles
    xb = 2 * tm * c_p * x_bytes         # double-buffered x tiles (f32 in)
    ob = 2 * tm * c_p * out_bytes       # double-buffered out tiles
    acc = tm * c_p * 4                  # f32 accumulator scratch
    inter = tm * th * 6                 # f32 hidden tile + its bf16 copy
    bias = 2 * 4 * (th + c_p)
    return w + xb + ob + acc + inter + bias


def _select_tiles(m128, c_p, h_p, x_bytes, out_bytes, cfg):
    budget = cfg["vmem_budget"]
    tm_cands = [t for t in (1024, 768, 512, 384, 256, 128)
                if t <= min(cfg["target_tm"], m128)] or [128]
    th_cands = [h_p // n for n in range(1, h_p // 128 + 1)
                if h_p % n == 0 and (h_p // n) % 128 == 0]

    def fits(tm, th):
        return _footprint_bytes(tm, th, c_p, x_bytes, out_bytes) <= budget

    def finalize(tm, th):
        n_m = _cdiv(m128, tm)
        # Keep both TensorCores busy / balanced on 2-core parts.
        if cfg["two_cores"] and m128 >= 256 and n_m % 2 == 1:
            n_m += 1
        tm = _round_up(_cdiv(m128, n_m), 128)
        m_p = n_m * tm
        return tm, n_m, m_p, th, h_p // th

    # 1) Prefer fully VMEM-resident weights (single hidden tile), biggest TM.
    for tm in tm_cands:
        if fits(tm, h_p):
            return finalize(tm, h_p)
    # 2) Otherwise split the hidden dim. Weight HBM traffic scales with the
    #    number of M tiles, so maximize TM first, then the hidden tile.
    for tm in tm_cands:
        for th in th_cands[1:]:
            if fits(tm, th):
                return finalize(tm, th)
    # 3) Best effort.
    return finalize(128, 128)


def _ffn_kernel(x_ref, w1_ref, b1_ref, w2_ref, b2_ref, o_ref, acc_ref):
    k = pl.program_id(1)

    @pl.when(k == 0)
    def _init():
        acc_ref[...] = jnp.zeros_like(acc_ref)

    # Cast the f32 activation tile to bf16 on-chip (VPU, hidden under the MXU).
    x = x_ref[...].astype(w1_ref.dtype)                          # (TM, Cp)
    # First linear + ReLU on this hidden-dim slice, f32 accumulation.
    h = jnp.dot(x, w1_ref[...], preferred_element_type=jnp.float32)
    h = jnp.maximum(h + b1_ref[...], 0.0)                        # (TM, TH) f32
    # Second linear: accumulate this hidden slice's contribution.
    acc_ref[...] += jnp.dot(h.astype(w2_ref.dtype), w2_ref[...],
                            preferred_element_type=jnp.float32)

    @pl.when(k == pl.num_programs(1) - 1)
    def _finalize():
        o_ref[...] = (acc_ref[...] + b2_ref[...]).astype(o_ref.dtype)


def feed_forward(x, params: FFNParams, *, out_dtype=None):
    """x: (batch, seq, n_embd). Returns same shape (dtype = out_dtype or x.dtype).

    Eval-mode forward of Linear(C,4C) -> ReLU -> Linear(4C,C) -> Dropout(id).
    """
    batch, seq, c = x.shape
    assert c == params.n_embd, (c, params.n_embd)
    if out_dtype is None:
        out_dtype = x.dtype
    cfg = _hw_config()
    c_p, h_p = params.c_p, params.h_p

    m = batch * seq
    m128 = _round_up(m, 128)
    x_bytes = jnp.dtype(x.dtype).itemsize
    out_bytes = jnp.dtype(out_dtype).itemsize

    tm, n_m, m_p, th, n_h = _select_tiles(m128, c_p, h_p, x_bytes, out_bytes, cfg)

    # Pad activations (kept in their original dtype; cast happens in-kernel).
    x2d = x.reshape(m, c)
    if m_p != m or c_p != c:
        x2d = jnp.pad(x2d, ((0, m_p - m), (0, c_p - c)))

    w_bytes = jnp.dtype(params.w1.dtype).itemsize
    weight_bytes = 2 * c_p * h_p * w_bytes
    cost = pl.CostEstimate(
        flops=4 * m_p * c_p * h_p,                    # two matmuls
        transcendentals=0,
        bytes_accessed=(m_p * c_p * (x_bytes + out_bytes)
                        + weight_bytes * (n_m if n_h > 1 else 1)
                        + 4 * (h_p + c_p)),
    )

    out2d = pl.pallas_call(
        _ffn_kernel,
        out_shape=jax.ShapeDtypeStruct((m_p, c_p), out_dtype),
        grid_spec=pltpu.PrefetchScalarGridSpec(
            num_scalar_prefetch=0,
            grid=(n_m, n_h),
            in_specs=[
                pl.BlockSpec((tm, c_p), lambda i, k: (i, 0)),   # x tile (f32)
                pl.BlockSpec((c_p, th), lambda i, k: (0, k)),   # W1 col-block
                pl.BlockSpec((1, th), lambda i, k: (0, k)),     # b1 block
                pl.BlockSpec((th, c_p), lambda i, k: (k, 0)),   # W2 row-block
                pl.BlockSpec((1, c_p), lambda i, k: (0, 0)),    # b2 (resident)
            ],
            out_specs=pl.BlockSpec((tm, c_p), lambda i, k: (i, 0)),
            scratch_shapes=[pltpu.VMEM((tm, c_p), jnp.float32)],
        ),
        compiler_params=pltpu.CompilerParams(
            dimension_semantics=("parallel", "arbitrary"),
            vmem_limit_bytes=cfg["vmem_limit"],
        ),
        cost_estimate=cost,
    )(x2d, params.w1, params.b1, params.w2, params.b2)

    return out2d[:m, :c].reshape(batch, seq, c)


def init_params(key, n_embd):
    """Deterministic init mimicking nn.Linear's U(-1/sqrt(fan_in), 1/sqrt(fan_in)).

    Weights are stored [in_dim, out_dim] (transposed from PyTorch's [out, in]).
    """
    hidden = 4 * n_embd
    k1, k2, k3, k4 = jax.random.split(key, 4)
    bound1 = 1.0 / math.sqrt(n_embd)
    bound2 = 1.0 / math.sqrt(hidden)
    w1 = jax.random.uniform(k1, (n_embd, hidden), jnp.float32, -bound1, bound1)
    b1 = jax.random.uniform(k2, (hidden,), jnp.float32, -bound1, bound1)
    w2 = jax.random.uniform(k3, (hidden, n_embd), jnp.float32, -bound2, bound2)
    b2 = jax.random.uniform(k4, (n_embd,), jnp.float32, -bound2, bound2)
    return w1, b1, w2, b2


if __name__ == "__main__":
    key = jax.random.PRNGKey(0)
    kx, kp = jax.random.split(key)

    batch, seq, n_embd = 2, 8, 32
    x = jax.random.normal(kx, (batch, seq, n_embd), dtype=jnp.float32)
    w1, b1, w2, b2 = init_params(kp, n_embd)

    # One-time weight prep (pad + bf16 cast), reused across calls.
    params = prepare_feed_forward_params(w1, b1, w2, b2)

    out = jax.block_until_ready(feed_forward(x, params))

    # Plain-JAX f32 reference (eval-mode dropout == identity); tolerance is
    # loosened because MXU operands are cast to bf16 (f32 accumulation).
    ref = jnp.maximum(x.reshape(-1, n_embd) @ w1 + b1, 0.0) @ w2 + b2
    ref = ref.reshape(batch, seq, n_embd)
    assert out.shape == (batch, seq, n_embd)
    assert out.dtype == x.dtype
    assert jnp.allclose(out, ref, atol=5e-2, rtol=5e-2), float(
        jnp.max(jnp.abs(out - ref)))

    print("KERNEL_OK")
</pallas_src>

<mosaic_0001>
module attributes {stable_mosaic.version = 11 : i64} {
  func.func @_ffn_kernel(%arg0: i32, %arg1: i32, %arg2: memref<128x128xf32, #tpu.memory_space<vmem>>, %arg3: memref<128x128xbf16, #tpu.memory_space<vmem>>, %arg4: memref<1x128xf32, #tpu.memory_space<vmem>>, %arg5: memref<128x128xbf16, #tpu.memory_space<vmem>>, %arg6: memref<1x128xf32, #tpu.memory_space<vmem>>, %arg7: memref<128x128xf32, #tpu.memory_space<vmem>>, %arg8: memref<128x128xf32, #tpu.memory_space<vmem>>) attributes {dimension_semantics = [#tpu.dimension_semantics<parallel>, #tpu.dimension_semantics<arbitrary>], iteration_bounds = array<i64: 1, 1>, scalar_prefetch = 0 : i64, scratch_operands = 1 : i64, tpu.core_type = #tpu.core_type<tc>, window_params = [{transform_indices = @transform_0, window_bounds = array<i64: 128, 128>}, {transform_indices = @transform_1, window_bounds = array<i64: 128, 128>}, {transform_indices = @transform_2, window_bounds = array<i64: 1, 128>}, {transform_indices = @transform_3, window_bounds = array<i64: 128, 128>}, {pipeline_mode = #tpu.pipeline_mode<synchronous>, transform_indices = @transform_4, window_bounds = array<i64: 1, 128>}, {transform_indices = @transform_5, window_bounds = array<i64: 128, 128>}]} {
    %c0_i32 = arith.constant 0 : i32
    %0 = arith.cmpi eq, %arg1, %c0_i32 : i32
    %1 = arith.extui %0 : i1 to i32
    %c0_i32_0 = arith.constant 0 : i32
    %2 = arith.cmpi ne, %1, %c0_i32_0 : i32
    scf.if %2 {
      %cst_16 = arith.constant 0.000000e+00 : f32
      %21 = vector.broadcast %cst_16 : f32 to vector<128x128xf32>
      %c0_17 = arith.constant 0 : index
      %c0_18 = arith.constant 0 : index
      %22 = vector.load %arg8[%c0_17, %c0_18] : memref<128x128xf32, #tpu.memory_space<vmem>>, vector<128x128xf32>
      tpu.vector_store %arg8[%c0_17, %c0_18], %21 {strides = array<i32>} : memref<128x128xf32, #tpu.memory_space<vmem>>, vector<128x128xf32>,
    } else {
    }
    %c0 = arith.constant 0 : index
    %c0_1 = arith.constant 0 : index
    %3 = vector.load %arg2[%c0, %c0_1] : memref<128x128xf32, #tpu.memory_space<vmem>>, vector<128x128xf32>
    %4 = arith.truncf %3 : vector<128x128xf32> to vector<128x128xbf16>
    %c0_2 = arith.constant 0 : index
    %c0_3 = arith.constant 0 : index
    %5 = vector.load %arg3[%c0_2, %c0_3] : memref<128x128xbf16, #tpu.memory_space<vmem>>, vector<128x128xbf16>
    %cst = arith.constant dense<0.000000e+00> : vector<128x128xf32>
    %6 = tpu.matmul %4, %5, %cst {dimension_numbers = #tpu.dot_dimension_numbers<[1], [0], [0], [1], [0, 0, 1, 1], [], []>} : vector<128x128xbf16>, vector<128x128xbf16>, vector<128x128xf32> -> vector<128x128xf32>
    %c0_4 = arith.constant 0 : index
    %c0_5 = arith.constant 0 : index
    %7 = vector.load %arg4[%c0_4, %c0_5] : memref<1x128xf32, #tpu.memory_space<vmem>>, vector<1x128xf32>
    %8 = vector.broadcast %7 : vector<1x128xf32> to vector<128x128xf32>
    %9 = arith.addf %6, %8 : vector<128x128xf32>
    %cst_6 = arith.constant 0.000000e+00 : f32
    %10 = vector.broadcast %cst_6 : f32 to vector<128x128xf32>
    %11 = arith.maximumf %9, %10 : vector<128x128xf32>
    %c0_7 = arith.constant 0 : index
    %c0_8 = arith.constant 0 : index
    %12 = vector.load %arg8[%c0_7, %c0_8] : memref<128x128xf32, #tpu.memory_space<vmem>>, vector<128x128xf32>
    %13 = arith.truncf %11 : vector<128x128xf32> to vector<128x128xbf16>
    %c0_9 = arith.constant 0 : index
    %c0_10 = arith.constant 0 : index
    %14 = vector.load %arg5[%c0_9, %c0_10] : memref<128x128xbf16, #tpu.memory_space<vmem>>, vector<128x128xbf16>
    %cst_11 = arith.constant dense<0.000000e+00> : vector<128x128xf32>
    %15 = tpu.matmul %13, %14, %cst_11 {dimension_numbers = #tpu.dot_dimension_numbers<[1], [0], [0], [1], [0, 0, 1, 1], [], []>} : vector<128x128xbf16>, vector<128x128xbf16>, vector<128x128xf32> -> vector<128x128xf32>
    %16 = arith.addf %12, %15 : vector<128x128xf32>
    %c0_12 = arith.constant 0 : index
    %c0_13 = arith.constant 0 : index
    %17 = vector.load %arg8[%c0_12, %c0_13] : memref<128x128xf32, #tpu.memory_space<vmem>>, vector<128x128xf32>
    tpu.vector_store %arg8[%c0_12, %c0_13], %16 {strides = array<i32>} : memref<128x128xf32, #tpu.memory_space<vmem>>, vector<128x128xf32>,
    %c0_i32_14 = arith.constant 0 : i32
    %18 = arith.cmpi eq, %arg1, %c0_i32_14 : i32
    %19 = arith.extui %18 : i1 to i32
    %c0_i32_15 = arith.constant 0 : i32
    %20 = arith.cmpi ne, %19, %c0_i32_15 : i32
    scf.if %20 {
      %c0_16 = arith.constant 0 : index
      %c0_17 = arith.constant 0 : index
      %21 = vector.load %arg8[%c0_16, %c0_17] : memref<128x128xf32, #tpu.memory_space<vmem>>, vector<128x128xf32>
      %c0_18 = arith.constant 0 : index
      %c0_19 = arith.constant 0 : index
      %22 = vector.load %arg6[%c0_18, %c0_19] : memref<1x128xf32, #tpu.memory_space<vmem>>, vector<1x128xf32>
      %23 = vector.broadcast %22 : vector<1x128xf32> to vector<128x128xf32>
      %24 = arith.addf %21, %23 : vector<128x128xf32>
      %c0_20 = arith.constant 0 : index
      %c0_21 = arith.constant 0 : index
      %25 = vector.load %arg7[%c0_20, %c0_21] : memref<128x128xf32, #tpu.memory_space<vmem>>, vector<128x128xf32>
      tpu.vector_store %arg7[%c0_20, %c0_21], %24 {strides = array<i32>} : memref<128x128xf32, #tpu.memory_space<vmem>>, vector<128x128xf32>,
    } else {
    }
    return
  }
  func.func @transform_0(%arg0: i32, %arg1: i32) -> (i32, i32) {
    %c0_i32 = arith.constant 0 : i32
    %c0_i32_0 = arith.constant 0 : i32
    return %arg0, %c0_i32 : i32, i32
  }
  func.func @transform_1(%arg0: i32, %arg1: i32) -> (i32, i32) {
    %c0_i32 = arith.constant 0 : i32
    %c0_i32_0 = arith.constant 0 : i32
    return %c0_i32, %arg1 : i32, i32
  }
  func.func @transform_2(%arg0: i32, %arg1: i32) -> (i32, i32) {
    %c0_i32 = arith.constant 0 : i32
    %c0_i32_0 = arith.constant 0 : i32
    return %c0_i32, %arg1 : i32, i32
  }
  func.func @transform_3(%arg0: i32, %arg1: i32) -> (i32, i32) {
    %c0_i32 = arith.constant 0 : i32
    %c0_i32_0 = arith.constant 0 : i32
    return %arg1, %c0_i32 : i32, i32
  }
  func.func @transform_4(%arg0: i32, %arg1: i32) -> (i32, i32) {
    %c0_i32 = arith.constant 0 : i32
    %c0_i32_0 = arith.constant 0 : i32
    %c0_i32_1 = arith.constant 0 : i32
    return %c0_i32, %c0_i32_0 : i32, i32
  }
  func.func @transform_5(%arg0: i32, %arg1: i32) -> (i32, i32) {
    %c0_i32 = arith.constant 0 : i32
    %c0_i32_0 = arith.constant 0 : i32
    return %arg0, %c0_i32 : i32, i32
  }
}

</mosaic_0001>

<bundles_post_ra>
// kernel: tpu_custom_call.1
= control target key start
LH: loop header
LB: loop body
LE: loop exit
PB: predicated region body
PF: predicated region fallthrough
CT: control target
= control target key end

     0   :  { %10 = vsyncpa [#allocation4], 0  ;;  %s1006_s0 = inlined_call_operand.hbm [shape: f32[128,128], index: 0, kind: input, shape index: {}]   ;;  %s1007_s1 = inlined_call_operand.hbm [shape: bf16[128,128], index: 1, kind: input, shape index: {}]   ;;  %s1008_s2 = inlined_call_operand.hbm [shape: f32[1,128], index: 2, kind: input, shape index: {}]   ;;  %s1009_s3 = inlined_call_operand.hbm [shape: bf16[128,128], index: 3, kind: input, shape index: {}]   ;;  %s1010_s4 = inlined_call_operand.hbm [shape: f32[1,128], index: 4, kind: input, shape index: {}]   ;;  %s1011_s5 = inlined_call_operand.hbm [shape: f32[128,128], index: 5, kind: output, shape index: {}]  }
   0x1   :  { %11 = vsyncpa [#allocation7], 0 }
   0x2   :  { %12 = vsyncpa [#allocation10], 0 }
   0x3   :  { %13 = vsyncpa [#allocation5], 0  ;;  %s888_s18 = smov [#allocation6]   ;;  %s748_s22 = scalar_lea.hbm %s1007_s1, 1024 }
   0x4   :  { %s31_s19 = sshll.u32 %s888_s18, 4  ;;  %p749_p0 = scmp.ne.s32.totalorder %s1007_s1, %s748_s22  ;;  %s32_s19 = int_to_ptr.vmem [resolvable:$true] %s31_s19 }
   0x5   :  { %p752_p1 = scmp.lt.u32.totalorder %s748_s22, %s1007_s1 }
   0x7   :  { %p754_p2 = pnand %p752_p1, %p749_p0 }
   0x9   :  { %757 = shalt.err (!%p754_p2)
}
   0xa   :  { %s758_s27 = scalar_lea.vmem %s32_s19, 1024  ;;  %p763_p4 = scmp.lt.s32.totalorder %s32_s19, %s32_s19 }
   0xb   :  { %p759_p3 = scmp.ne.s32.totalorder %s32_s19, %s758_s27  ;;  %p764_p5 = scmp.lt.s32.totalorder %s758_s27, %s758_s27 }
   0xd   :  { %p765_p6 = por %p764_p5, %p763_p4 }
   0xf   :  { %p766_p7 = pnand %p765_p6, %p759_p3 }
  0x11   :  { %769 = shalt.err (!%p766_p7)
}
  0x12   :  { %s889_s28 = smov 64   ;;  %s890_s29 = smov 4  }
  0x13   :  { %37 = dma.hbm_to_vmem [thread:$0]  %s1007_s1, 1024, %s32_s19, [#allocation7], %s889_s28, %s889_s28, %s890_s29  }
  0x14   :  { %s891_s7 = smov [#allocation9]   ;;  %s892_s9 = smov [#allocation3]  }
  0x15   :  { %s53_s8 = sshll.u32 %s891_s7, 4  ;;  %s19_s10 = sshll.u32 %s892_s9, 4  ;;  %s54_s8 = int_to_ptr.vmem [resolvable:$true] %s53_s8  ;;  %s20_s10 = int_to_ptr.vmem [resolvable:$true] %s19_s10 }
  0x16   :  { %s770_s13 = scalar_lea.hbm %s1009_s3, 1024 }
  0x17   :  { %p771_p8 = scmp.ne.s32.totalorder %s1009_s3, %s770_s13  ;;  %p774_p9 = scmp.lt.u32.totalorder %s770_s13, %s1009_s3 }
  0x19   :  { %p776_p10 = pnand %p774_p9, %p771_p8 }
  0x1b   :  { %779 = shalt.err (!%p776_p10)
}
  0x1c   :  { %s780_s1 = scalar_lea.vmem %s54_s8, 1024  ;;  %p785_p12 = scmp.lt.s32.totalorder %s54_s8, %s54_s8 }
  0x1d   :  { %p781_p11 = scmp.ne.s32.totalorder %s54_s8, %s780_s1  ;;  %p786_p13 = scmp.lt.s32.totalorder %s780_s1, %s780_s1 }
  0x1f   :  { %p787_p0 = por %p786_p13, %p785_p12 }
  0x21   :  { %p788_p1 = pnand %p787_p0, %p781_p11 }
  0x23   :  { %791 = shalt.err (!%p788_p1)
}
  0x24   :  { %59 = dma.hbm_to_vmem [thread:$0]  %s1009_s3, 1024, %s54_s8, [#allocation10], %s889_s28, %s889_s28, %s890_s29  }
  0x25   :  { %s792_s22 = scalar_lea.hbm %s1006_s0, 2048 }
  0x26   :  { %p793_p2 = scmp.ne.s32.totalorder %s1006_s0, %s792_s22  ;;  %p796_p3 = scmp.lt.u32.totalorder %s792_s22, %s1006_s0 }
  0x28   :  { %p798_p4 = pnand %p796_p3, %p793_p2 }
  0x2a   :  { %801 = shalt.err (!%p798_p4)
}
  0x2b   :  { %s802_s27 = scalar_lea.vmem %s20_s10, 2048  ;;  %p807_p6 = scmp.lt.s32.totalorder %s20_s10, %s20_s10 }
  0x2c   :  { %p803_p5 = scmp.ne.s32.totalorder %s20_s10, %s802_s27  ;;  %p808_p7 = scmp.lt.s32.totalorder %s802_s27, %s802_s27 }
  0x2e   :  { %p809_p8 = por %p808_p7, %p807_p6 }
  0x30   :  { %p810_p9 = pnand %p809_p8, %p803_p5 }
  0x32   :  { %813 = shalt.err (!%p810_p9)
}
  0x33   :  { %s893_s3 = smov 128   ;;  %s894_s28 = smov 8  }
  0x34   :  { %25 = dma.hbm_to_vmem [thread:$0]  %s1006_s0, 2048, %s20_s10, [#allocation4], %s893_s3, %s893_s3, %s894_s28  }
  0x35   :  { %s895_s6 = smov [#allocation8]   ;;  %s896_s8 = smov [#allocation11]  }
  0x36   :  { %s44_s7 = sshll.u32 %s895_s6, 4  ;;  %s66_s9 = sshll.u32 %s896_s8, 4  ;;  %s45_s7 = int_to_ptr.vmem [resolvable:$true] %s44_s7  ;;  %s67_s9 = int_to_ptr.vmem [resolvable:$true] %s66_s9 }
  0x37   :  { %s814_s13 = scalar_lea.hbm %s1008_s2, 16 }
  0x38   :  { %p815_p10 = scmp.ne.s32.totalorder %s1008_s2, %s814_s13  ;;  %p818_p11 = scmp.lt.u32.totalorder %s814_s13, %s1008_s2 }
  0x3a   :  { %p820_p12 = pnand %p818_p11, %p815_p10 }
  0x3c   :  { %823 = shalt.err (!%p820_p12)
}
  0x3d   :  { %s824_s0 = scalar_lea.vmem %s45_s7, 16  ;;  %s828_s10 = scalar_lea.vmem %s45_s7, 32 }
  0x3e   :  { %p825_p13 = scmp.ne.s32.totalorder %s45_s7, %s824_s0  ;;  %p829_p0 = scmp.lt.s32.totalorder %s45_s7, %s45_s7 }
  0x3f   :  { %p830_p1 = scmp.lt.s32.totalorder %s828_s10, %s824_s0 }
  0x41   :  { %p831_p2 = por %p830_p1, %p829_p0 }
  0x43   :  { %p832_p3 = pnand %p831_p2, %p825_p13 }
  0x45   :  { %835 = shalt.err (!%p832_p3)
}
  0x46   :  { %47 = dma.hbm_to_vmem [thread:$0]  %s1008_s2, 16, %s45_s7, [#allocation7]  }
  0x47   :  { %s836_s21 = scalar_lea.hbm %s1010_s4, 16 }
  0x48   :  { %p837_p4 = scmp.ne.s32.totalorder %s1010_s4, %s836_s21  ;;  %p840_p5 = scmp.lt.u32.totalorder %s836_s21, %s1010_s4 }
  0x4a   :  { %p842_p6 = pnand %p840_p5, %p837_p4 }
  0x4c   :  { %845 = shalt.err (!%p842_p6)
}
  0x4d   :  { %s846_s26 = scalar_lea.vmem %s67_s9, 16  ;;  %s850_s27 = scalar_lea.vmem %s67_s9, 32 }
  0x4e   :  { %p847_p7 = scmp.ne.s32.totalorder %s67_s9, %s846_s26  ;;  %p851_p8 = scmp.lt.s32.totalorder %s67_s9, %s67_s9 }
  0x4f   :  { %p852_p9 = scmp.lt.s32.totalorder %s850_s27, %s846_s26 }
  0x51   :  { %p853_p10 = por %p852_p9, %p851_p8 }
  0x53   :  { %p854_p11 = pnand %p853_p10, %p847_p7 }
  0x55   :  { %857 = shalt.err (!%p854_p11)
}
  0x56   :  { %69 = dma.hbm_to_vmem [thread:$0]  %s1010_s4, 16, %s67_s9, [#allocation10]  }
  0x57   :  { %880 = dma.done.wait [#allocation4], 2048  }
  0x58   :  { %881 = vsyncadd [#allocation4], 4294965248 }
  0x59   :  { %882 = dma.done.wait [#allocation7], 1040  }
  0x5a   :  { %883 = vsyncadd [#allocation7], 4294966256 }
  0x5b   :  { %884 = dma.done.wait [#allocation10], 1040  }
  0x5c   :  { %885 = vsyncadd [#allocation10], 4294966256  ;;  %v732_v0 = vld [vmem:[#allocation6] sm:$0xff]   ;;  %v733_v1 = vld [vmem:[#allocation6 + $0x8] sm:$0xff]   ;;  %s897_s4 = smov [#allocation12]  }
  0x5d   :  { %658 = vmatprep.subr.bf16.mxu0 %v732_v0  ;;  %v734_v2 = vld [vmem:[#allocation6 + $0x10] sm:$0xff]   ;;  %v735_v3 = vld [vmem:[#allocation6 + $0x18] sm:$0xff]   ;;  %v106_v4 = vld [vmem:[#allocation3] sm:$0xff]  ;;  %s594_s30 = sshll.u32 %s897_s4, 4  ;;  %s595_s30 = int_to_ptr.vmem [resolvable:$true] %s594_s30 }
  0x5e   :  { %659 = vmatpush3.bf16.msra.mxu0 %v732_v0  ;;  %v107_v5 = vld [vmem:[#allocation3 + $0x8] sm:$0xff]  ;;  %v736_v7 = vld [vmem:[#allocation6 + $0x20] sm:$0xff]   ;;  %v742_v11 = vld [vmem:[#allocation9 + $0x10] sm:$0xff]   ;;  %s858_s6 = scalar_lea.vmem %s595_s30, 2048  ;;  %p863_p13 = scmp.lt.s32.totalorder %s595_s30, %s595_s30 }
  0x5f   :  { %660 = vmatprep.subr.bf16.mxu0 %v733_v1  ;;  %v122_v6 = vpack.c.bf16 %v107_v5, %v106_v4  ;;  %v740_v8 = vld [vmem:[#allocation9] sm:$0xff]   ;;  %v741_v9 = vld [vmem:[#allocation9 + $0x8] sm:$0xff]   ;;  %v743_v13 = vld [vmem:[#allocation9 + $0x18] sm:$0xff]   ;;  %p859_p12 = scmp.ne.s32.totalorder %s595_s30, %s858_s6  ;;  %p864_p0 = scmp.lt.s32.totalorder %s858_s6, %s858_s6 }
  0x60   :  { %v737_v10 = vld [vmem:[#allocation6 + $0x28] sm:$0xff]   ;;  %690 = vmatprep.subr.bf16.mxu1 %v740_v8  ;;  %v738_v12 = vld [vmem:[#allocation6 + $0x30] sm:$0xff]   ;;  %v739_v14 = vld [vmem:[#allocation6 + $0x38] sm:$0xff]  }
  0x61   :  { %674 = vmatprep.mubr.bf16.mxu0 %v122_v6  ;;  %691 = vmatpush3.bf16.msra.mxu1 %v740_v8  ;;  %v744_v15 = vld [vmem:[#allocation9 + $0x20] sm:$0xff]   ;;  %v108_v16 = vld [vmem:[#allocation3 + $0x10] sm:$0xff]  ;;  %v109_v17 = vld [vmem:[#allocation3 + $0x18] sm:$0xff]  ;;  %p865_p1 = por %p864_p0, %p863_p13 }
  0x62   :  { %661 = vmatpush3.bf16.msra.mxu0 %v733_v1  ;;  %692 = vmatprep.subr.bf16.mxu1 %v741_v9  ;;  %v110_v18 = vld [vmem:[#allocation3 + $0x20] sm:$0xff]  ;;  %v111_v19 = vld [vmem:[#allocation3 + $0x28] sm:$0xff]  ;;  %v123_v20 = vpack.c.bf16 %v109_v17, %v108_v16  ;;  %v112_v23 = vld [vmem:[#allocation3 + $0x30] sm:$0xff] }
  0x63   :  { %662 = vmatprep.subr.bf16.mxu0 %v734_v2  ;;  %v745_v21 = vld [vmem:[#allocation9 + $0x28] sm:$0xff]   ;;  %v124_v22 = vpack.c.bf16 %v111_v19, %v110_v18  ;;  %v113_v24 = vld [vmem:[#allocation3 + $0x38] sm:$0xff]  ;;  %v114_v25 = vld [vmem:[#allocation3 + $0x40] sm:$0xff]  ;;  %p866_p2 = pnand %p865_p1, %p859_p12 }
  0x64   :  { %v115_v26 = vld [vmem:[#allocation3 + $0x48] sm:$0xff]  ;;  %v125_v27 = vpack.c.bf16 %v113_v24, %v112_v23  ;;  %v116_v29 = vld [vmem:[#allocation3 + $0x50] sm:$0xff]  ;;  %v117_v30 = vld [vmem:[#allocation3 + $0x58] sm:$0xff] }
  0x65   :  { %693 = vmatpush3.bf16.msra.mxu1 %v741_v9  ;;  %v126_v28 = vpack.c.bf16 %v115_v26, %v114_v25  ;;  %v118_v31 = vld [vmem:[#allocation3 + $0x60] sm:$0xff]  ;;  %v119_v32 = vld [vmem:[#allocation3 + $0x68] sm:$0xff]  ;;  %v127_v33 = vpack.c.bf16 %v117_v30, %v116_v29  ;;  %v120_v35 = vld [vmem:[#allocation3 + $0x70] sm:$0xff] }
  0x66   :  { %663 = vmatpush3.bf16.msra.mxu0 %v734_v2  ;;  %694 = vmatprep.subr.bf16.mxu1 %v742_v11  ;;  %v128_v34 = vpack.c.bf16 %v119_v32, %v118_v31  ;;  %v121_v36 = vld [vmem:[#allocation3 + $0x78] sm:$0xff]  ;;  %v608_v40 = vld [vmem:[#allocation8] ss:$0 sm:$0xff] }
  0x67   :  { %664 = vmatprep.subr.bf16.mxu0 %v735_v3  ;;  %v129_v37 = vpack.c.bf16 %v121_v36, %v120_v35  ;;  %v746_v38 = vld [vmem:[#allocation9 + $0x30] sm:$0xff]   ;;  %v747_v39 = vld [vmem:[#allocation9 + $0x38] sm:$0xff]  }
  0x69   :  { %695 = vmatpush3.bf16.msra.mxu1 %v742_v11 }
  0x6a   :  { %665 = vmatpush3.bf16.msra.mxu0 %v735_v3  ;;  %696 = vmatprep.subr.bf16.mxu1 %v743_v13 }
  0x6b   :  { %666 = vmatprep.subr.bf16.mxu0 %v736_v7 }
  0x6d   :  { %697 = vmatpush3.bf16.msra.mxu1 %v743_v13 }
  0x6e   :  { %667 = vmatpush3.bf16.msra.mxu0 %v736_v7  ;;  %698 = vmatprep.subr.bf16.mxu1 %v744_v15 }
  0x6f   :  { %668 = vmatprep.subr.bf16.mxu0 %v737_v10 }
  0x71   :  { %699 = vmatpush3.bf16.msra.mxu1 %v744_v15 }
  0x72   :  { %669 = vmatpush3.bf16.msra.mxu0 %v737_v10  ;;  %700 = vmatprep.subr.bf16.mxu1 %v745_v21 }
  0x73   :  { %670 = vmatprep.subr.bf16.mxu0 %v738_v12 }
  0x75   :  { %701 = vmatpush3.bf16.msra.mxu1 %v745_v21 }
  0x76   :  { %671 = vmatpush3.bf16.msra.mxu0 %v738_v12  ;;  %702 = vmatprep.subr.bf16.mxu1 %v746_v38 }
  0x77   :  { %672 = vmatprep.subr.bf16.mxu0 %v739_v14 }
  0x79   :  { %703 = vmatpush3.bf16.msra.mxu1 %v746_v38 }
  0x7a   :  { %673 = vmatpush3.bf16.msra.mxu0 %v739_v14  ;;  %704 = vmatprep.subr.bf16.mxu1 %v747_v39 }
  0x7d   :  { %675 = vmatmul.mubr.bf16.vlgmr.msra.gmra.mrb[0].mxu0 %v123_v20  ;;  %705 = vmatpush3.bf16.msra.mxu1 %v747_v39 }
  0x7e   :  { %678 = vmatprep.mubr.bf16.mxu0 %v124_v22 }
  0x85   :  { %679 = vmatmul.mubr.bf16.gmra.mrb[4].mxu0 %v125_v27 }
  0x86   :  { %682 = vmatprep.mubr.bf16.mxu0 %v126_v28 }
  0x8d   :  { %683 = vmatmul.mubr.bf16.gmra.mrb[8].mxu0 %v127_v33  ;;  %v625_v33 = vld [vmem:[#allocation11] ss:$0 sm:$0xff] }
  0x8e   :  { %686 = vmatprep.mubr.bf16.mxu0 %v128_v34 }
  0x95   :  { %687 = vmatmul.mubr.bf16.gmra.mrb[12].mxu0 %v129_v37 }
 0x150   :  { %v676_v41 = vpop.f32.mrb[0].mxu0 }
 0x151   :  { %v244_v42 = vadd.f32 %v676_v41, %v608_v40  ;;  %v235_v43 = vpop.f32.mrb[1].mxu0 }
 0x152   :  { %v236_v44 = vadd.f32 %v608_v40, %v235_v43  ;;  %v677_v45 = vpop.f32.mrb[2].mxu0 }
 0x153   :  { %v247_v46 = vadd.f32 %v677_v45, %v608_v40  ;;  %v238_v47 = vpop.f32.mrb[3].mxu0  ;;  %v300_v49 = vmax.f32 %v244_v42, 0.0 }
 0x154   :  { %v239_v48 = vadd.f32 %v608_v40, %v238_v47  ;;  %v298_v51 = vmax.f32 %v236_v44, 0.0 }
 0x155   :  { %v301_v50 = vmax.f32 %v247_v46, 0.0 }
 0x156   :  { %v299_v52 = vmax.f32 %v239_v48, 0.0 }
 0x157   :  { %v331_v53 = vpack.c.bf16 %v301_v50, %v300_v49 }
 0x158   :  { %v680_v54 = vpop.f32.mrb[4].mxu0  ;;  %v330_v55 = vpack.c.bf16 %v299_v52, %v298_v51 }
 0x159   :  { %v260_v56 = vadd.f32 %v680_v54, %v608_v40  ;;  %v251_v57 = vpop.f32.mrb[5].mxu0 }
 0x15a   :  { %v252_v58 = vadd.f32 %v608_v40, %v251_v57  ;;  %v681_v59 = vpop.f32.mrb[6].mxu0  ;;  %706 = vmatprep.mubr.bf16.mxu1 %v330_v55 }
 0x15b   :  { %v263_v60 = vadd.f32 %v681_v59, %v608_v40  ;;  %v254_v61 = vpop.f32.mrb[7].mxu0  ;;  %707 = vmatmul.mubr.bf16.vlgmr.msra.gmra.mrb[0].mxu1 %v331_v53  ;;  %v304_v63 = vmax.f32 %v260_v56, 0.0 }
 0x15c   :  { %v255_v62 = vadd.f32 %v608_v40, %v254_v61  ;;  %v302_v1 = vmax.f32 %v252_v58, 0.0 }
 0x15d   :  { %v305_v0 = vmax.f32 %v263_v60, 0.0 }
 0x15e   :  { %v303_v2 = vmax.f32 %v255_v62, 0.0 }
 0x15f   :  { %v333_v3 = vpack.c.bf16 %v305_v0, %v304_v63 }
 0x160   :  { %v332_v4 = vpack.c.bf16 %v303_v2, %v302_v1  ;;  %v684_v5 = vpop.f32.mrb[8].mxu0 }
 0x161   :  { %v276_v6 = vadd.f32 %v684_v5, %v608_v40  ;;  %v267_v7 = vpop.f32.mrb[9].mxu0 }
 0x162   :  { %v268_v8 = vadd.f32 %v608_v40, %v267_v7  ;;  %v685_v9 = vpop.f32.mrb[10].mxu0  ;;  %710 = vmatprep.mubr.bf16.mxu1 %v332_v4 }
 0x163   :  { %v279_v10 = vadd.f32 %v685_v9, %v608_v40  ;;  %v270_v11 = vpop.f32.mrb[11].mxu0  ;;  %711 = vmatmul.mubr.bf16.gmra.mrb[4].mxu1 %v333_v3  ;;  %v308_v13 = vmax.f32 %v276_v6, 0.0 }
 0x164   :  { %v271_v12 = vadd.f32 %v608_v40, %v270_v11  ;;  %v306_v15 = vmax.f32 %v268_v8, 0.0 }
 0x165   :  { %v309_v14 = vmax.f32 %v279_v10, 0.0 }
 0x166   :  { %v307_v16 = vmax.f32 %v271_v12, 0.0 }
 0x167   :  { %v335_v17 = vpack.c.bf16 %v309_v14, %v308_v13 }
 0x168   :  { %v334_v18 = vpack.c.bf16 %v307_v16, %v306_v15  ;;  %v688_v19 = vpop.f32.mrb[12].mxu0 }
 0x169   :  { %v292_v20 = vadd.f32 %v688_v19, %v608_v40  ;;  %v283_v21 = vpop.f32.mrb[13].mxu0 }
 0x16a   :  { %v284_v22 = vadd.f32 %v608_v40, %v283_v21  ;;  %v689_v23 = vpop.f32.mrb[14].mxu0  ;;  %714 = vmatprep.mubr.bf16.mxu1 %v334_v18 }
 0x16b   :  { %v295_v24 = vadd.f32 %v689_v23, %v608_v40  ;;  %v286_v25 = vpop.f32.mrb[15].mxu0  ;;  %715 = vmatmul.mubr.bf16.gmra.mrb[8].mxu1 %v335_v17  ;;  %v312_v27 = vmax.f32 %v292_v20, 0.0 }
 0x16c   :  { %v287_v26 = vadd.f32 %v608_v40, %v286_v25  ;;  %v310_v29 = vmax.f32 %v284_v22, 0.0 }
 0x16d   :  { %v313_v28 = vmax.f32 %v295_v24, 0.0 }
 0x16e   :  { %v311_v30 = vmax.f32 %v287_v26, 0.0 }
 0x16f   :  { %v337_v31 = vpack.c.bf16 %v313_v28, %v312_v27 }
 0x170   :  { %v336_v32 = vpack.c.bf16 %v311_v30, %v310_v29 }
 0x172   :  { %718 = vmatprep.mubr.bf16.mxu1 %v336_v32 }
 0x173   :  { %719 = vmatmul.mubr.bf16.gmra.mrb[12].mxu1 %v337_v31 }
 0x22e   :  { %v708_v34 = vpop.f32.mrb[0].mxu1 }
 0x22f   :  { %v559_v35 = vadd.f32 %v708_v34, %v625_v33  ;;  %v436_v36 = vpop.f32.mrb[1].mxu1 }
 0x230   :  { %v557_v37 = vadd.f32 %v625_v33, %v436_v36  ;;  %v709_v38 = vpop.f32.mrb[2].mxu1 }
 0x231   :  { %575 = vst [vmem:[#allocation12 + $0x10] sm:$0xff] %v559_v35  ;;  %v560_v39 = vadd.f32 %v709_v38, %v625_v33  ;;  %v439_v41 = vpop.f32.mrb[3].mxu1 }
 0x232   :  { %573 = vst [vmem:[#allocation12] sm:$0xff] %v557_v37  ;;  %v558_v42 = vadd.f32 %v625_v33, %v439_v41 }
 0x233   :  { %576 = vst [vmem:[#allocation12 + $0x18] sm:$0xff] %v560_v39 }
 0x234   :  { %574 = vst [vmem:[#allocation12 + $0x8] sm:$0xff] %v558_v42 }
 0x236   :  { %v712_v40 = vpop.f32.mrb[4].mxu1 }
 0x237   :  { %v563_v43 = vadd.f32 %v712_v40, %v625_v33  ;;  %v452_v44 = vpop.f32.mrb[5].mxu1 }
 0x238   :  { %v561_v45 = vadd.f32 %v625_v33, %v452_v44  ;;  %v713_v46 = vpop.f32.mrb[6].mxu1 }
 0x239   :  { %579 = vst [vmem:[#allocation12 + $0x30] sm:$0xff] %v563_v43  ;;  %v564_v47 = vadd.f32 %v713_v46, %v625_v33  ;;  %v455_v48 = vpop.f32.mrb[7].mxu1 }
 0x23a   :  { %577 = vst [vmem:[#allocation12 + $0x20] sm:$0xff] %v561_v45  ;;  %v562_v49 = vadd.f32 %v625_v33, %v455_v48 }
 0x23b   :  { %580 = vst [vmem:[#allocation12 + $0x38] sm:$0xff] %v564_v47 }
 0x23c   :  { %578 = vst [vmem:[#allocation12 + $0x28] sm:$0xff] %v562_v49 }
 0x23e   :  { %v716_v50 = vpop.f32.mrb[8].mxu1 }
 0x23f   :  { %v567_v51 = vadd.f32 %v716_v50, %v625_v33  ;;  %v468_v52 = vpop.f32.mrb[9].mxu1 }
 0x240   :  { %v565_v53 = vadd.f32 %v625_v33, %v468_v52  ;;  %v717_v54 = vpop.f32.mrb[10].mxu1 }
 0x241   :  { %583 = vst [vmem:[#allocation12 + $0x50] sm:$0xff] %v567_v51  ;;  %v568_v55 = vadd.f32 %v717_v54, %v625_v33  ;;  %v471_v56 = vpop.f32.mrb[11].mxu1 }
 0x242   :  { %581 = vst [vmem:[#allocation12 + $0x40] sm:$0xff] %v565_v53  ;;  %v566_v57 = vadd.f32 %v625_v33, %v471_v56 }
 0x243   :  { %584 = vst [vmem:[#allocation12 + $0x58] sm:$0xff] %v568_v55 }
 0x244   :  { %582 = vst [vmem:[#allocation12 + $0x48] sm:$0xff] %v566_v57 }
 0x246   :  { %v720_v58 = vpop.f32.mrb[12].mxu1 }
 0x247   :  { %v571_v59 = vadd.f32 %v720_v58, %v625_v33  ;;  %v484_v60 = vpop.f32.mrb[13].mxu1 }
 0x248   :  { %v569_v61 = vadd.f32 %v625_v33, %v484_v60  ;;  %v721_v62 = vpop.f32.mrb[14].mxu1 }
 0x249   :  { %587 = vst [vmem:[#allocation12 + $0x70] sm:$0xff] %v571_v59  ;;  %v572_v63 = vadd.f32 %v721_v62, %v625_v33  ;;  %v487_v0 = vpop.f32.mrb[15].mxu1 }
 0x24a   :  { %585 = vst [vmem:[#allocation12 + $0x60] sm:$0xff] %v569_v61  ;;  %v570_v1 = vadd.f32 %v625_v33, %v487_v0 }
 0x24b   :  { %588 = vst [vmem:[#allocation12 + $0x78] sm:$0xff] %v572_v63 }
 0x24c   :  { %586 = vst [vmem:[#allocation12 + $0x68] sm:$0xff] %v570_v1 }
 0x24d   :  { %869 = shalt.err (!%p866_p2)
}
 0x24e   :  { %s870_s9 = scalar_lea.hbm %s1011_s5, 2048 }
 0x24f   :  { %p871_p3 = scmp.ne.s32.totalorder %s1011_s5, %s870_s9  ;;  %p874_p4 = scmp.lt.u32.totalorder %s870_s9, %s1011_s5 }
 0x251   :  { %p876_p5 = pnand %p874_p4, %p871_p3 }
 0x253   :  { %879 = shalt.err (!%p876_p5)
}
 0x254   :  { %600 = dma.vmem_to_hbm [thread:$0]  %s595_s30, 2048, %s1011_s5, [#allocation5], %s893_s3, %s893_s3, %s894_s28  }
 0x255   :  { %886 = dma.done.wait [#allocation5], 2048  }
 0x256   :  { %887 = vsyncadd [#allocation5], 4294965248 }
 0x257   :  { %604 = vsyncpa [#allocation4], 1 }
 0x258   :  { %605 = vsyncpa [#allocation7], 1 }
 0x259   :  { %606 = vsyncpa [#allocation10], 1 }
 0x25a   :  { %607 = vsyncpa [#allocation5], 1 }

</bundles_post_ra>
